<compile_context>
chip_gen: v6e
topology: v6e:2x2x1
jax: 0.10.0
libtpu: 0.0.40
codegen_flags: <defaults>
</compile_context>

<pallas_src>
import functools

import jax
import jax.numpy as jnp
from jax.experimental import pallas as pl
from jax.experimental.pallas import tpu as pltpu

LANE = 128                     # channel dims are padded to the TPU lane width
_HEADROOM = 4 * 1024 * 1024    # VMEM headroom left for Mosaic temporaries


def _round_up(x, m):
    return (x + m - 1) // m * m


def _vmem_limit():
    """Scoped VMEM budget, derived from the chip (v5e/v6e ~96MiB, v7x ~48MiB)."""
    cap = None
    try:
        cap = int(getattr(pltpu.get_tpu_info(), "vmem_capacity_bytes", 0)) or None
    except Exception:
        cap = None
    if cap is None:
        cap = 64 * 1024 * 1024          # conservative (v7x-sized) default
    return max(32 * 1024 * 1024, min(96 * 1024 * 1024, (cap * 3) // 4))


def _compiler_params(dims, limit):
    return pltpu.CompilerParams(dimension_semantics=dims,
                                vmem_limit_bytes=int(limit))


# ----------------------------- tile selection -------------------------------

def _pick_tk(ks):
    for t in (512, 256, 128):
        if all(k % t == 0 for k in ks):
            return t
    return 128


def _pick_tn(nc):
    if nc <= 512:
        return nc
    for t in (512, 256, 128):
        if nc % t == 0:
            return t
    return 128


def _mm_bytes(tm, tk, tn, n_act_streams, out_bytes):
    b = n_act_streams * 2 * tm * tk * 2     # activation block(s), bf16, double-buffered
    b += n_act_streams * 2 * tk * tn * 2    # weight block(s), bf16, double-buffered
    b += 2 * tm * tn * out_bytes            # output block, double-buffered
    b += 2 * tm * tn * 4                    # f32 accumulator scratch + dot temporary
    b += 4 * (tm + tn) * 4                  # bias / mask blocks (generous)
    return b


def _row_tiling(M, fits, cap=1024):
    """Largest row tile (multiple of 16, then 8) that divides M and fits VMEM.
    Falls back to (tile, padded_M) only when M has no usable divisor."""
    for step in (16, 8):
        tm = (min(cap, M) // step) * step
        while tm >= step:
            if M % tm == 0 and fits(tm):
                return tm, M
            tm -= step
    tm = 256
    while tm > 16 and not fits(tm):
        tm //= 2
    return tm, _round_up(M, tm)


# ----------------------------- Pallas kernels -------------------------------

def _mm_bias_relu_mask_kernel(x_ref, w_ref, b_ref, m_ref, o_ref, acc_ref):
    """out = relu(x @ w + b) * mask (BN scale pre-folded into w, f32 accum).
    The mask zeroes the W-halo columns so they can act as conv2's padding."""
    k = pl.program_id(2)
    prod = jnp.dot(x_ref[...], w_ref[...], preferred_element_type=jnp.float32)

    @pl.when(k == 0)
    def _init():
        acc_ref[...] = prod

    @pl.when(k > 0)
    def _acc():
        acc_ref[...] += prod

    @pl.when(k == pl.num_programs(2) - 1)
    def _fin():
        y = jnp.maximum(acc_ref[...] + b_ref[...], 0.0) * m_ref[...]
        o_ref[...] = y.astype(o_ref.dtype)


def _mm_fused_shortcut_kernel(x_ref, w_ref, r_ref, wr_ref, b_ref, o_ref, acc_ref,
                              *, nk_main, nk_res):
    """out = relu(x @ w + r @ wr + b).  conv3+bn3 fused with the projection
    shortcut (1x1 conv + bn); both reductions are spread over the k grid axis."""
    k = pl.program_id(2)

    @pl.when(k == 0)
    def _init():
        acc_ref[...] = jnp.dot(x_ref[...], w_ref[...],
                               preferred_element_type=jnp.float32)

    @pl.when(jnp.logical_and(k > 0, k < nk_main))
    def _main():
        acc_ref[...] += jnp.dot(x_ref[...], w_ref[...],
                                preferred_element_type=jnp.float32)

    @pl.when(k < nk_res)
    def _shortcut():
        acc_ref[...] += jnp.dot(r_ref[...], wr_ref[...],
                                preferred_element_type=jnp.float32)

    @pl.when(k == pl.num_programs(2) - 1)
    def _fin():
        o_ref[...] = jnp.maximum(acc_ref[...] + b_ref[...], 0.0).astype(o_ref.dtype)


def _conv3x3_kernel(x_ref, w_ref, b_ref, o_ref, pad_ref, acc_ref,
                    *, H, Wp, Cin, top):
    """3x3 'same' conv (stride 1) on the W-padded ('wide') layout.
    Each tap is a uniform *flat shift* of one per-image padded VMEM buffer:
    x_ref:(H*Wp, Cin) with zeroed halo columns, pad_ref adds zero rows for the
    H padding.  9 accumulating MXU matmuls; accumulator initialised with tap 0
    and the bias folded in."""
    Mimg = H * Wp
    total = pad_ref.shape[0]

    # Fill the padded image buffer once per image (grid is n-major, j-minor and
    # the j axis is "arbitrary", so every Cout tile of an image reuses it).
    @pl.when(pl.program_id(1) == 0)
    def _fill():
        pad_ref[pl.ds(0, top), :] = jnp.zeros((top, Cin), pad_ref.dtype)
        tail = total - (top + Mimg)
        pad_ref[pl.ds(top + Mimg, tail), :] = jnp.zeros((tail, Cin), pad_ref.dtype)
        pad_ref[pl.ds(top, Mimg), :] = x_ref[...]

    def tap(t):
        kh, kw = divmod(t, 3)
        start = top + (kh - 1) * Wp + (kw - 1)       # static flat shift
        patch = pad_ref[pl.ds(start, Mimg), :]
        w_tap = w_ref[t * Cin:(t + 1) * Cin, :]
        return jnp.dot(patch, w_tap, preferred_element_type=jnp.float32)

    acc_ref[...] = tap(0) + b_ref[...]
    for t in range(1, 9):
        acc_ref[...] += tap(t)
    o_ref[...] = jnp.maximum(acc_ref[...], 0.0).astype(o_ref.dtype)


# ------------------------------ Pallas wrappers ------------------------------

def conv1x1_bias_relu_mask(x2d, w2d, bias2d, mask2d, *, out_dtype):
    M, K = x2d.shape
    Kw, Nc = w2d.shape
    assert K == Kw
    limit = _vmem_limit()
    tk = _pick_tk([K])
    tn = _pick_tn(Nc)
    out_bytes = jnp.dtype(out_dtype).itemsize
    fits = lambda tm: _mm_bytes(tm, tk, tn, 1, out_bytes) <= limit - _HEADROOM
    tm, Mp = _row_tiling(M, fits)
    if Mp != M:                                  # rare fallback path
        x2d = jnp.pad(x2d, ((0, Mp - M), (0, 0)))
        mask2d = jnp.pad(mask2d, ((0, Mp - M), (0, 0)))
    out = pl.pallas_call(
        _mm_bias_relu_mask_kernel,
        out_shape=jax.ShapeDtypeStruct((Mp, Nc), out_dtype),
        grid=(Mp // tm, Nc // tn, K // tk),
        in_specs=[
            pl.BlockSpec((tm, tk), lambda i, j, k: (i, k)),
            pl.BlockSpec((tk, tn), lambda i, j, k: (k, j)),
            pl.BlockSpec((1, tn), lambda i, j, k: (0, j)),
            pl.BlockSpec((tm, 1), lambda i, j, k: (i, 0)),
        ],
        out_specs=pl.BlockSpec((tm, tn), lambda i, j, k: (i, j)),
        scratch_shapes=[pltpu.VMEM((tm, tn), jnp.float32)],
        compiler_params=_compiler_params(("parallel", "parallel", "arbitrary"), limit),
    )(x2d, w2d, bias2d, mask2d)
    return out if Mp == M else out[:M]


def matmul_fused_shortcut_relu(x2d, w2d, r2d, wr2d, bias2d, *, out_dtype):
    M, K = x2d.shape
    Kw, Nc = w2d.shape
    Mr, Kr = r2d.shape
    assert K == Kw and Mr == M and wr2d.shape == (Kr, Nc)
    limit = _vmem_limit()
    tk = _pick_tk([K, Kr])
    tn = _pick_tn(Nc)
    out_bytes = jnp.dtype(out_dtype).itemsize
    fits = lambda tm: _mm_bytes(tm, tk, tn, 2, out_bytes) <= limit - _HEADROOM
    tm, Mp = _row_tiling(M, fits)
    if Mp != M:                                  # rare fallback path
        x2d = jnp.pad(x2d, ((0, Mp - M), (0, 0)))
        r2d = jnp.pad(r2d, ((0, Mp - M), (0, 0)))
    nk_main, nk_res = K // tk, Kr // tk
    nk = max(nk_main, nk_res)
    out = pl.pallas_call(
        functools.partial(_mm_fused_shortcut_kernel,
                          nk_main=nk_main, nk_res=nk_res),
        out_shape=jax.ShapeDtypeStruct((Mp, Nc), out_dtype),
        grid=(Mp // tm, Nc // tn, nk),
        in_specs=[
            # Clamped index maps: past the end of their own reduction they keep
            # returning the previous block index, so Pallas skips the re-fetch.
            pl.BlockSpec((tm, tk), lambda i, j, k: (i, jnp.minimum(k, nk_main - 1))),
            pl.BlockSpec((tk, tn), lambda i, j, k: (jnp.minimum(k, nk_main - 1), j)),
            pl.BlockSpec((tm, tk), lambda i, j, k: (i, jnp.minimum(k, nk_res - 1))),
            pl.BlockSpec((tk, tn), lambda i, j, k: (jnp.minimum(k, nk_res - 1), j)),
            pl.BlockSpec((1, tn), lambda i, j, k: (0, j)),
        ],
        out_specs=pl.BlockSpec((tm, tn), lambda i, j, k: (i, j)),
        scratch_shapes=[pltpu.VMEM((tm, tn), jnp.float32)],
        compiler_params=_compiler_params(("parallel", "parallel", "arbitrary"), limit),
    )(x2d, w2d, r2d, wr2d, bias2d)
    return out if Mp == M else out[:M]


def conv3x3_bias_relu(h1_wide, w2d, bias2d, *, H, Wp, out_dtype):
    """Stride-1 3x3 conv + bias + relu on the wide layout.
    h1_wide: (N, H*Wp, Cin) with zeroed halo columns (w'==0, w'==Wp-1)."""
    N, Mimg, Cin = h1_wide.shape
    assert Mimg == H * Wp
    KW, Cout = w2d.shape
    assert KW == 9 * Cin
    limit = _vmem_limit()
    top = _round_up(Wp + 1, 8)                   # aligned interior-copy offset
    total = _round_up(top + Mimg + Wp + 1, 8)
    out_bytes = jnp.dtype(out_dtype).itemsize

    def need(tn):
        b = 2 * Mimg * Cin * 2                   # image block (double-buffered)
        b += total * Cin * 2                     # padded-image scratch
        b += 2 * KW * tn * 2                     # weight block
        b += 2 * Mimg * tn * 4                   # f32 accumulator + dot temp
        b += 2 * Mimg * tn * out_bytes           # output block
        return b

    tn = next((t for t in ([Cout] if Cout <= 512 else []) + [512, 256, 128]
               if Cout % t == 0 and need(t) <= limit - _HEADROOM), 128)

    return pl.pallas_call(
        functools.partial(_conv3x3_kernel, H=H, Wp=Wp, Cin=Cin, top=top),
        out_shape=jax.ShapeDtypeStruct((N, Mimg, Cout), out_dtype),
        grid=(N, Cout // tn),
        in_specs=[
            pl.BlockSpec((None, Mimg, Cin), lambda n, j: (n, 0, 0)),
            pl.BlockSpec((KW, tn), lambda n, j: (0, j)),
            pl.BlockSpec((1, tn), lambda n, j: (0, j)),
        ],
        out_specs=pl.BlockSpec((None, Mimg, tn), lambda n, j: (n, 0, j)),
        scratch_shapes=[pltpu.VMEM((total, Cin), h1_wide.dtype),
                        pltpu.VMEM((Mimg, tn), jnp.float32)],
        # TODO(synk): add an output-row tile axis (manual halo DMA) for very
        # large images / more v7x megacore parallelism; per-image granularity
        # is fine at ResNet image sizes.
        compiler_params=_compiler_params(("parallel", "arbitrary"), limit),
    )(h1_wide, w2d, bias2d)


# ------------------------------- parameters ----------------------------------

def _fold_bn(gamma, beta, mean, var, eps=1e-5):
    scale = gamma / jnp.sqrt(var + eps)
    bias = beta - mean * scale
    return scale, bias


def _pad2(a, rows, cols):
    return jnp.pad(a, ((0, rows - a.shape[0]), (0, cols - a.shape[1])))


def init_bottleneck_params(key, cfg, first, stride):
    """Deterministic init.  Conv weights start in PyTorch layout (Cout,Cin,kh,kw);
    the BN scale is folded into the matmul-layout weights, bias kept separately."""
    c0, c1, c2, c3 = cfg
    keys = jax.random.split(key, 8)

    def conv_w(k, cout, cin, ksz):
        return 0.1 * jax.random.normal(k, (cout, cin, ksz, ksz), jnp.float32)

    def bn_p(k, c):
        ka, kb, kc, kd = jax.random.split(k, 4)
        gamma = 0.5 + jax.random.uniform(ka, (c,), jnp.float32)
        beta = 0.1 * jax.random.normal(kb, (c,), jnp.float32)
        mean = 0.1 * jax.random.normal(kc, (c,), jnp.float32)
        var = 0.5 + jax.random.uniform(kd, (c,), jnp.float32)
        return gamma, beta, mean, var

    w1 = conv_w(keys[0], c1, c0, 1)
    w2 = conv_w(keys[1], c2, c1, 3)
    w3 = conv_w(keys[2], c3, c2, 1)
    wsc = conv_w(keys[3], c3, c0, 1)      # this module always has a conv+bn shortcut

    s1, b1 = _fold_bn(*bn_p(keys[4], c1))
    s2, b2 = _fold_bn(*bn_p(keys[5], c2))
    s3, b3 = _fold_bn(*bn_p(keys[6], c3))
    ssc, bsc = _fold_bn(*bn_p(keys[7], c3))

    # folded matmul-layout weights (f32, unpadded) -- also used by the reference
    w1m = w1[:, :, 0, 0].T * s1[None, :]            # (c0, c1)
    w2m = jnp.transpose(w2, (2, 3, 1, 0)) * s2      # (3,3,c1,c2), per-Cout scaled
    w3m = w3[:, :, 0, 0].T * s3[None, :]            # (c2, c3)
    wscm = wsc[:, :, 0, 0].T * ssc[None, :]         # (c0, c3)

    C0p, C1p, C2p, C3p = (_round_up(c, LANE) for c in cfg)
    w2p = jnp.pad(w2m, ((0, 0), (0, 0), (0, C1p - c1), (0, C2p - c2)))
    w2p = w2p.reshape(9 * C1p, C2p)

    return {
        "cfg": tuple(cfg),
        "stride": stride,
        "shortcut_stride": stride if first else 1,
        # kernel-side: lane-padded, bf16 weights for the MXU; biases stay f32
        "w1": _pad2(w1m, C0p, C1p).astype(jnp.bfloat16),
        "w2": w2p.astype(jnp.bfloat16),
        "w3": _pad2(w3m, C2p, C3p).astype(jnp.bfloat16),
        "wsc": _pad2(wscm, C0p, C3p).astype(jnp.bfloat16),
        "b1": jnp.pad(b1, (0, C1p - c1)).reshape(1, C1p).astype(jnp.float32),
        "b2": jnp.pad(b2, (0, C2p - c2)).reshape(1, C2p).astype(jnp.float32),
        "b3sc": jnp.pad(b3 + bsc, (0, C3p - c3)).reshape(1, C3p).astype(jnp.float32),
        # reference-side: f32, unpadded
        "ref": {"w1": w1m, "w2": w2m, "w3": w3m, "wsc": wscm,
                "b1": b1, "b2": b2, "b3": b3, "bsc": bsc},
    }


# --------------------------------- forward -----------------------------------

def bottleneck_forward(x_nchw, params):
    stride = params["stride"]
    sc_stride = params["shortcut_stride"]
    c0, c1, c2, c3 = params["cfg"]
    C0p, C1p = params["w1"].shape
    C2p, C3p = params["w3"].shape

    # TODO(synk): NCHW<->NHWC transposes kept only for the PyTorch-facing API;
    # keep NHWC (+padded channels, bf16) between blocks if the surrounding
    # network runs this layout end-to-end.
    x = jnp.transpose(x_nchw, (0, 2, 3, 1)).astype(jnp.float32)
    N, H, W, _ = x.shape
    Wp = W + 2
    Mimg = H * Wp
    Mw = N * Mimg

    # single pad: W halo (reused as conv2's zero padding) + channel pad, cast bf16
    xw = jnp.pad(x, ((0, 0), (0, 0), (1, 1), (0, C0p - c0))).astype(jnp.bfloat16)
    xw2 = xw.reshape(Mw, C0p)

    # per-row mask that zeroes the two halo columns in conv1's output
    col = jnp.arange(Wp, dtype=jnp.int32)
    wmask = ((col > 0) & (col < Wp - 1)).astype(jnp.float32)
    wmask = jnp.tile(wmask, N * H).reshape(Mw, 1)

    # conv1 (1x1) + bn1 + relu (+ halo-column zeroing)
    h1 = conv1x1_bias_relu_mask(xw2, params["w1"], params["b1"], wmask,
                                out_dtype=jnp.bfloat16)

    # conv2 (3x3, pad=1) + bn2 + relu -- flat-shift taps, in-kernel H padding
    h2 = conv3x3_bias_relu(h1.reshape(N, Mimg, C1p), params["w2"], params["b2"],
                           H=H, Wp=Wp, out_dtype=jnp.bfloat16)

    if stride == 1:
        # conv3 (1x1) + bn3 + fused shortcut (1x1 conv + bn) + add + relu
        out2d = matmul_fused_shortcut_relu(
            h2.reshape(Mw, C2p), params["w3"], xw2, params["wsc"],
            params["b3sc"], out_dtype=jnp.float32)
        out = out2d.reshape(N, H, Wp, C3p)[:, :, 1:1 + W, :c3]
    else:
        # TODO(synk): stride>1 falls back to the stride-1 conv + decimation
        # (wastes ~stride^2 of the conv2 MXU work); a strided-tap kernel path
        # would avoid it.
        h2d = h2.reshape(N, H, Wp, C2p)[:, ::stride, 1:1 + W:stride, :]
        xs = xw[:, ::sc_stride, 1:1 + W:sc_stride, :]
        assert h2d.shape[1:3] == xs.shape[1:3], (
            "main-path/shortcut spatial shapes disagree (non-first block with "
            "stride>1 is unsupported, exactly as in the PyTorch module)")
        Ho, Wo = h2d.shape[1], h2d.shape[2]
        out2d = matmul_fused_shortcut_relu(
            h2d.reshape(N * Ho * Wo, C2p), params["w3"],
            xs.reshape(N * Ho * Wo, C0p), params["wsc"],
            params["b3sc"], out_dtype=jnp.float32)
        out = out2d.reshape(N, Ho, Wo, C3p)[..., :c3]

    return jnp.transpose(out, (0, 3, 1, 2))


# -------------------------------- reference ----------------------------------

def bottleneck_reference(x_nchw, params, *, match_kernel_precision=False):
    """Plain-JAX reference.  With match_kernel_precision=True it applies the same
    bf16 operand/intermediate casts as the Pallas path (tight comparison);
    otherwise it is pure f32 (semantic check, loose tolerance)."""
    p = params["ref"]
    stride = params["stride"]
    sc_stride = params["shortcut_stride"]

    if match_kernel_precision:
        cast = lambda a: a.astype(jnp.bfloat16)
        snap = lambda a: a.astype(jnp.bfloat16).astype(jnp.float32)
    else:
        cast = lambda a: a
        snap = lambda a: a

    def dot(a, b):
        return jnp.dot(cast(a), cast(b), preferred_element_type=jnp.float32)

    x = jnp.transpose(x_nchw, (0, 2, 3, 1)).astype(jnp.float32)
    N, H, W, c0 = x.shape
    c1 = p["w1"].shape[1]
    c2 = p["w3"].shape[0]

    h1 = jnp.maximum(dot(x.reshape(-1, c0), p["w1"]) + p["b1"], 0.0)
    h1 = snap(h1).reshape(N, H, W, c1)

    h1p = jnp.pad(h1, ((0, 0), (1, 1), (1, 1), (0, 0)))
    Ho = (H - 1) // stride + 1
    Wo = (W - 1) // stride + 1
    acc = jnp.zeros((N * Ho * Wo, c2), jnp.float32)
    for kh in range(3):
        for kw in range(3):
            patch = h1p[:, kh:kh + 1 + stride * (Ho - 1):stride,
                           kw:kw + 1 + stride * (Wo - 1):stride, :]
            acc = acc + dot(patch.reshape(-1, c1), p["w2"][kh, kw])
    h2 = snap(jnp.maximum(acc + p["b2"], 0.0))

    xs = x[:, ::sc_stride, ::sc_stride, :]
    out = (dot(h2, p["w3"]) + p["b3"]
           + dot(xs.reshape(-1, c0), p["wsc"]) + p["bsc"])
    out = jnp.maximum(out, 0.0).reshape(N, Ho, Wo, -1)
    return jnp.transpose(out, (0, 3, 1, 2))


# ----------------------------------- main -------------------------------------

if __name__ == "__main__":
    key = jax.random.PRNGKey(0)
    k_x, k_p = jax.random.split(key)

    cfg = [4, 8, 8, 16]      # [in, mid1, mid2, out]
    first = True
    stride = 1

    x = jax.random.normal(k_x, (2, cfg[0], 16, 16), jnp.float32)  # NCHW input
    params = init_bottleneck_params(k_p, cfg, first, stride)

    out = jax.block_until_ready(bottleneck_forward(x, params))
    assert out.shape == (2, cfg[3], 16, 16)

    # Tight check vs. a precision-matched (bf16 operands / intermediates) reference.
    ref_m = jax.block_until_ready(
        bottleneck_reference(x, params, match_kernel_precision=True))
    assert jnp.allclose(out, ref_m, atol=2e-3, rtol=2e-3), (
        "max abs err vs matched ref: %f" % float(jnp.max(jnp.abs(out - ref_m))))

    # Loose sanity check vs. the pure-f32 reference (bf16 rounding budget).
    ref_f = jax.block_until_ready(bottleneck_reference(x, params))
    assert jnp.allclose(out, ref_f, atol=5e-2, rtol=5e-2), (
        "max abs err vs f32 ref: %f" % float(jnp.max(jnp.abs(out - ref_f))))

    print("KERNEL_OK")
</pallas_src>

<mosaic_0001>
module attributes {stable_mosaic.version = 11 : i64} {
  func.func @_mm_bias_relu_mask_kernel(%arg0: i32, %arg1: i32, %arg2: i32, %arg3: memref<576x128xbf16, #tpu.memory_space<vmem>>, %arg4: memref<128x128xbf16, #tpu.memory_space<vmem>>, %arg5: memref<1x128xf32, #tpu.memory_space<vmem>>, %arg6: memref<576x1xf32, #tpu.memory_space<vmem>>, %arg7: memref<576x128xbf16, #tpu.memory_space<vmem>>, %arg8: memref<576x128xf32, #tpu.memory_space<vmem>>) attributes {dimension_semantics = [#tpu.dimension_semantics<parallel>, #tpu.dimension_semantics<parallel>, #tpu.dimension_semantics<arbitrary>], iteration_bounds = array<i64: 1, 1, 1>, scalar_prefetch = 0 : i64, scratch_operands = 1 : i64, tpu.core_type = #tpu.core_type<tc>, window_params = [{transform_indices = @transform_0, window_bounds = array<i64: 576, 128>}, {transform_indices = @transform_1, window_bounds = array<i64: 128, 128>}, {transform_indices = @transform_2, window_bounds = array<i64: 1, 128>}, {transform_indices = @transform_3, window_bounds = array<i64: 576, 1>}, {transform_indices = @transform_4, window_bounds = array<i64: 576, 128>}]} {
    %c0 = arith.constant 0 : index
    %c0_0 = arith.constant 0 : index
    %0 = vector.load %arg3[%c0, %c0_0] : memref<576x128xbf16, #tpu.memory_space<vmem>>, vector<576x128xbf16>
    %c0_1 = arith.constant 0 : index
    %c0_2 = arith.constant 0 : index
    %1 = vector.load %arg4[%c0_1, %c0_2] : memref<128x128xbf16, #tpu.memory_space<vmem>>, vector<128x128xbf16>
    %cst = arith.constant dense<0.000000e+00> : vector<576x128xf32>
    %2 = tpu.matmul %0, %1, %cst {dimension_numbers = #tpu.dot_dimension_numbers<[1], [0], [0], [1], [0, 0, 1, 1], [], []>} : vector<576x128xbf16>, vector<128x128xbf16>, vector<576x128xf32> -> vector<576x128xf32>
    %c0_i32 = arith.constant 0 : i32
    %3 = arith.cmpi eq, %arg2, %c0_i32 : i32
    %4 = arith.extui %3 : i1 to i32
    %c0_i32_3 = arith.constant 0 : i32
    %5 = arith.cmpi ne, %4, %c0_i32_3 : i32
    scf.if %5 {
      %c0_8 = arith.constant 0 : index
      %c0_9 = arith.constant 0 : index
      %12 = vector.load %arg8[%c0_8, %c0_9] : memref<576x128xf32, #tpu.memory_space<vmem>>, vector<576x128xf32>
      tpu.vector_store %arg8[%c0_8, %c0_9], %2 {strides = array<i32>} : memref<576x128xf32, #tpu.memory_space<vmem>>, vector<576x128xf32>,
    } else {
    }
    %c0_i32_4 = arith.constant 0 : i32
    %6 = arith.cmpi sgt, %arg2, %c0_i32_4 : i32
    %7 = arith.extui %6 : i1 to i32
    %c0_i32_5 = arith.constant 0 : i32
    %8 = arith.cmpi ne, %7, %c0_i32_5 : i32
    scf.if %8 {
      %c0_8 = arith.constant 0 : index
      %c0_9 = arith.constant 0 : index
      %12 = vector.load %arg8[%c0_8, %c0_9] : memref<576x128xf32, #tpu.memory_space<vmem>>, vector<576x128xf32>
      %13 = arith.addf %12, %2 : vector<576x128xf32>
      %c0_10 = arith.constant 0 : index
      %c0_11 = arith.constant 0 : index
      %14 = vector.load %arg8[%c0_10, %c0_11] : memref<576x128xf32, #tpu.memory_space<vmem>>, vector<576x128xf32>
      tpu.vector_store %arg8[%c0_10, %c0_11], %13 {strides = array<i32>} : memref<576x128xf32, #tpu.memory_space<vmem>>, vector<576x128xf32>,
    } else {
    }
    %c0_i32_6 = arith.constant 0 : i32
    %9 = arith.cmpi eq, %arg2, %c0_i32_6 : i32
    %10 = arith.extui %9 : i1 to i32
    %c0_i32_7 = arith.constant 0 : i32
    %11 = arith.cmpi ne, %10, %c0_i32_7 : i32
    scf.if %11 {
      %c0_8 = arith.constant 0 : index
      %c0_9 = arith.constant 0 : index
      %12 = vector.load %arg8[%c0_8, %c0_9] : memref<576x128xf32, #tpu.memory_space<vmem>>, vector<576x128xf32>
      %c0_10 = arith.constant 0 : index
      %c0_11 = arith.constant 0 : index
      %13 = vector.load %arg5[%c0_10, %c0_11] : memref<1x128xf32, #tpu.memory_space<vmem>>, vector<1x128xf32>
      %14 = vector.broadcast %13 : vector<1x128xf32> to vector<576x128xf32>
      %15 = arith.addf %12, %14 : vector<576x128xf32>
      %cst_12 = arith.constant 0.000000e+00 : f32
      %16 = vector.broadcast %cst_12 : f32 to vector<576x128xf32>
      %17 = arith.maximumf %15, %16 : vector<576x128xf32>
      %c0_13 = arith.constant 0 : index
      %c0_14 = arith.constant 0 : index
      %18 = vector.load %arg6[%c0_13, %c0_14] : memref<576x1xf32, #tpu.memory_space<vmem>>, vector<576x1xf32>
      %19 = vector.broadcast %18 : vector<576x1xf32> to vector<576x128xf32>
      %20 = arith.mulf %17, %19 : vector<576x128xf32>
      %21 = arith.truncf %20 : vector<576x128xf32> to vector<576x128xbf16>
      %c0_15 = arith.constant 0 : index
      %c0_16 = arith.constant 0 : index
      %22 = vector.load %arg7[%c0_15, %c0_16] : memref<576x128xbf16, #tpu.memory_space<vmem>>, vector<576x128xbf16>
      tpu.vector_store %arg7[%c0_15, %c0_16], %21 {strides = array<i32>} : memref<576x128xbf16, #tpu.memory_space<vmem>>, vector<576x128xbf16>,
    } else {
    }
    return
  }
  func.func @transform_0(%arg0: i32, %arg1: i32, %arg2: i32) -> (i32, i32) {
    %c0_i32 = arith.constant 0 : i32
    return %arg0, %arg2 : i32, i32
  }
  func.func @transform_1(%arg0: i32, %arg1: i32, %arg2: i32) -> (i32, i32) {
    %c0_i32 = arith.constant 0 : i32
    return %arg2, %arg1 : i32, i32
  }
  func.func @transform_2(%arg0: i32, %arg1: i32, %arg2: i32) -> (i32, i32) {
    %c0_i32 = arith.constant 0 : i32
    %c0_i32_0 = arith.constant 0 : i32
    return %c0_i32, %arg1 : i32, i32
  }
  func.func @transform_3(%arg0: i32, %arg1: i32, %arg2: i32) -> (i32, i32) {
    %c0_i32 = arith.constant 0 : i32
    %c0_i32_0 = arith.constant 0 : i32
    return %arg0, %c0_i32 : i32, i32
  }
  func.func @transform_4(%arg0: i32, %arg1: i32, %arg2: i32) -> (i32, i32) {
    %c0_i32 = arith.constant 0 : i32
    return %arg0, %arg1 : i32, i32
  }
}

</mosaic_0001>

<bundles_post_ra>
// kernel: tpu_custom_call.1
= control target key start
LH: loop header
LB: loop body
LE: loop exit
PB: predicated region body
PF: predicated region fallthrough
CT: control target
= control target key end

     0   :  { %v2718_v2 = vmov 0   ;;  %s3355_s0 = inlined_call_operand.vmem [shape: bf16[576,128], index: 0, kind: input, shape index: {}]   ;;  %s3356_s1 = inlined_call_operand.vmem [shape: bf16[128,128], index: 1, kind: input, shape index: {}]   ;;  %s3357_s2 = inlined_call_operand.vmem [shape: f32[1,128], index: 2, kind: input, shape index: {}]   ;;  %s3358_s3 = inlined_call_operand.vmem [shape: f32[576,1], index: 3, kind: input, shape index: {}]   ;;  %s3359_s4 = inlined_call_operand.hbm [shape: bf16[576,128], index: 4, kind: output, shape index: {}]  }
   0x1   :  { %v1216_v0 = vld [vmem:[%s3358_s3 + $0x10] sm:$0xff]  ;;  %v1214_v1 = vld [vmem:[%s3358_s3] sm:$0xff]  ;;  %2651 = vset.pattern.permute.xlu1 %v2718_v2  ;;  %2650 = vset.pattern.permute.xlu0 %v2718_v2  ;;  %v2652_v3 = vld [vmem:[%s3356_s1 + $0x38] sm:$0xff]  }
   0x2   :  { %1298 = vperm.xlu1 %2651, %v1216_v0   ;;  %1288 = vperm.xlu0 %2650, %v1214_v1   ;;  %v1217_v4 = vld [vmem:[%s3358_s3 + $0x18] sm:$0xff]  ;;  %v1215_v5 = vld [vmem:[%s3358_s3 + $0x8] sm:$0xff]  ;;  %v2653_v6 = vld [vmem:[%s3356_s1 + $0x30] sm:$0xff]  }
   0x3   :  { %2542 = vmatprep.subr.bf16.mxu0 %v2652_v3  ;;  %2630 = vmatprep.subr.bf16.mxu1 %v2652_v3  ;;  %v2654_v7 = vld [vmem:[%s3356_s1 + $0x28] sm:$0xff]   ;;  %v1218_v9 = vld [vmem:[%s3358_s3 + $0x20] sm:$0xff]  ;;  %v1221_v11 = vld [vmem:[%s3358_s3 + $0x38] sm:$0xff] }
   0x4   :  { %2543 = vmatpush3.bf16.msra.mxu0 %v2652_v3  ;;  %2638 = vmatpush3.bf16.msra.mxu1 %v2652_v3  ;;  %v1219_v8 = vld [vmem:[%s3358_s3 + $0x28] sm:$0xff]  ;;  %v2655_v10 = vld [vmem:[%s3356_s1 + $0x20] sm:$0xff]   ;;  %v1220_v12 = vld [vmem:[%s3358_s3 + $0x30] sm:$0xff] }
   0x5   :  { %2544 = vmatprep.subr.bf16.mxu0 %v2653_v6  ;;  %2631 = vmatprep.subr.bf16.mxu1 %v2653_v6  ;;  %v1223_v13 = vld [vmem:[%s3358_s3 + $0x48] sm:$0xff]  ;;  %v1222_v14 = vld [vmem:[%s3358_s3 + $0x40] sm:$0xff]  ;;  %v2656_v15 = vld [vmem:[%s3356_s1 + $0x18] sm:$0xff]  }
   0x6   :  { %1303 = vperm.xlu1 %2651, %v1217_v4   ;;  %1293 = vperm.xlu0 %2650, %v1215_v5   ;;  %v2660_v16 = vld [vmem:[%s3355_s0] sm:$0xff]   ;;  %v2661_v17 = vld [vmem:[%s3355_s0 + $0x90] sm:$0xff]   ;;  %v1225_v19 = vld [vmem:[%s3358_s3 + $0x58] sm:$0xff] }
   0x7   :  { %v2657_v18 = vld [vmem:[%s3356_s1 + $0x10] sm:$0xff]   ;;  %2558 = vmatprep.mubr.bf16.mxu0 %v2660_v16  ;;  %2594 = vmatprep.mubr.bf16.mxu1 %v2661_v17  ;;  %v2658_v21 = vld [vmem:[%s3356_s1 + $0x8] sm:$0xff]   ;;  %v1226_v23 = vld [vmem:[%s3358_s3 + $0x60] sm:$0xff] }
   0x8   :  { %2545 = vmatpush3.bf16.msra.mxu0 %v2653_v6  ;;  %2639 = vmatpush3.bf16.msra.mxu1 %v2653_v6  ;;  %v1224_v20 = vld [vmem:[%s3358_s3 + $0x50] sm:$0xff]  ;;  %v1227_v22 = vld [vmem:[%s3358_s3 + $0x68] sm:$0xff]  ;;  %v2659_v24 = vld [vmem:[%s3356_s1] sm:$0xff]  }
   0x9   :  { %2546 = vmatprep.subr.bf16.mxu0 %v2654_v7  ;;  %2632 = vmatprep.subr.bf16.mxu1 %v2654_v7  ;;  %v1229_v25 = vld [vmem:[%s3358_s3 + $0x78] sm:$0xff]  ;;  %v1228_v26 = vld [vmem:[%s3358_s3 + $0x70] sm:$0xff]  ;;  %v1231_v27 = vld [vmem:[%s3358_s3 + $0x88] sm:$0xff] }
   0xa   :  { %1313 = vperm.xlu1 %2651, %v1219_v8   ;;  %1308 = vperm.xlu0 %2650, %v1218_v9   ;;  %v1230_v28 = vld [vmem:[%s3358_s3 + $0x80] sm:$0xff]  ;;  %v2662_v29 = vld [vmem:[%s3355_s0 + $0x8] sm:$0xff]   ;;  %v2663_v30 = vld [vmem:[%s3355_s0 + $0x98] sm:$0xff]  }
   0xb   :  { %v2664_v31 = vld [vmem:[%s3355_s0 + $0x10] sm:$0xff]   ;;  %v2665_v32 = vld [vmem:[%s3355_s0 + $0xa0] sm:$0xff]   ;;  %v1233_v33 = vld [vmem:[%s3358_s3 + $0x98] sm:$0xff] }
   0xc   :  { %2547 = vmatpush3.bf16.msra.mxu0 %v2654_v7  ;;  %2640 = vmatpush3.bf16.msra.mxu1 %v2654_v7  ;;  %v1232_v34 = vld [vmem:[%s3358_s3 + $0x90] sm:$0xff]  ;;  %v1235_v35 = vld [vmem:[%s3358_s3 + $0xa8] sm:$0xff]  ;;  %v1234_v36 = vld [vmem:[%s3358_s3 + $0xa0] sm:$0xff] }
   0xd   :  { %2548 = vmatprep.subr.bf16.mxu0 %v2655_v10  ;;  %2633 = vmatprep.subr.bf16.mxu1 %v2655_v10  ;;  %v2666_v37 = vld [vmem:[%s3355_s0 + $0x18] sm:$0xff]   ;;  %v2667_v38 = vld [vmem:[%s3355_s0 + $0xa8] sm:$0xff]   ;;  %v2668_v39 = vld [vmem:[%s3355_s0 + $0x20] sm:$0xff]  }
   0xe   :  { %1323 = vperm.xlu1 %2651, %v1221_v11   ;;  %1318 = vperm.xlu0 %2650, %v1220_v12   ;;  %v2669_v40 = vld [vmem:[%s3355_s0 + $0xb0] sm:$0xff]   ;;  %v1237_v41 = vld [vmem:[%s3358_s3 + $0xb8] sm:$0xff]  ;;  %v1239_v43 = vld [vmem:[%s3358_s3 + $0xc8] sm:$0xff] }
   0xf   :  { %v1236_v42 = vld [vmem:[%s3358_s3 + $0xb0] sm:$0xff]  ;;  %v1238_v44 = vld [vmem:[%s3358_s3 + $0xc0] sm:$0xff]  ;;  %v2670_v45 = vld [vmem:[%s3355_s0 + $0x28] sm:$0xff]  }
  0x10   :  { %2549 = vmatpush3.bf16.msra.mxu0 %v2655_v10  ;;  %2641 = vmatpush3.bf16.msra.mxu1 %v2655_v10  ;;  %v2671_v46 = vld [vmem:[%s3355_s0 + $0xb8] sm:$0xff]   ;;  %v2672_v47 = vld [vmem:[%s3355_s0 + $0x30] sm:$0xff]   ;;  %v2673_v48 = vld [vmem:[%s3355_s0 + $0xc0] sm:$0xff]  }
  0x11   :  { %2550 = vmatprep.subr.bf16.mxu0 %v2656_v15  ;;  %2634 = vmatprep.subr.bf16.mxu1 %v2656_v15  ;;  %v1241_v49 = vld [vmem:[%s3358_s3 + $0xd8] sm:$0xff]  ;;  %v1240_v50 = vld [vmem:[%s3358_s3 + $0xd0] sm:$0xff]  ;;  %v1243_v51 = vld [vmem:[%s3358_s3 + $0xe8] sm:$0xff] }
  0x12   :  { %1333 = vperm.xlu1 %2651, %v1223_v13   ;;  %1328 = vperm.xlu0 %2650, %v1222_v14   ;;  %v1242_v52 = vld [vmem:[%s3358_s3 + $0xe0] sm:$0xff]  ;;  %v2674_v53 = vld [vmem:[%s3355_s0 + $0x38] sm:$0xff]   ;;  %v2675_v54 = vld [vmem:[%s3355_s0 + $0xc8] sm:$0xff]  }
  0x13   :  { %v2676_v55 = vld [vmem:[%s3355_s0 + $0x40] sm:$0xff]   ;;  %v2677_v56 = vld [vmem:[%s3355_s0 + $0xd0] sm:$0xff]   ;;  %v1245_v57 = vld [vmem:[%s3358_s3 + $0xf8] sm:$0xff] }
  0x14   :  { %2551 = vmatpush3.bf16.msra.mxu0 %v2656_v15  ;;  %2642 = vmatpush3.bf16.msra.mxu1 %v2656_v15  ;;  %v1244_v58 = vld [vmem:[%s3358_s3 + $0xf0] sm:$0xff]  ;;  %v1247_v59 = vld [vmem:[%s3358_s3 + $0x108] sm:$0xff]  ;;  %v1246_v60 = vld [vmem:[%s3358_s3 + $0x100] sm:$0xff] }
  0x15   :  { %2552 = vmatprep.subr.bf16.mxu0 %v2657_v18  ;;  %2635 = vmatprep.subr.bf16.mxu1 %v2657_v18  ;;  %v2678_v61 = vld [vmem:[%s3355_s0 + $0x48] sm:$0xff]   ;;  %v2679_v62 = vld [vmem:[%s3355_s0 + $0xd8] sm:$0xff]   ;;  %v2680_v63 = vld [vmem:[%s3355_s0 + $0x50] sm:$0xff]  }
  0x16   :  { %1343 = vperm.xlu1 %2651, %v1225_v19   ;;  %1338 = vperm.xlu0 %2650, %v1224_v20   ;;  %v2681_v0 = vld [vmem:[%s3355_s0 + $0xe0] sm:$0xff]   ;;  %v1249_v1 = vld [vmem:[%s3358_s3 + $0x118] sm:$0xff]  ;;  %v1248_v2 = vld [vmem:[%s3358_s3 + $0x110] sm:$0xff] }
  0x18   :  { %2553 = vmatpush3.bf16.msra.mxu0 %v2657_v18  ;;  %2643 = vmatpush3.bf16.msra.mxu1 %v2657_v18 }
  0x19   :  { %2554 = vmatprep.subr.bf16.mxu0 %v2658_v21  ;;  %2636 = vmatprep.subr.bf16.mxu1 %v2658_v21 }
  0x1a   :  { %1353 = vperm.xlu1 %2651, %v1227_v22   ;;  %1348 = vperm.xlu0 %2650, %v1226_v23  }
  0x1c   :  { %2555 = vmatpush3.bf16.msra.mxu0 %v2658_v21  ;;  %2644 = vmatpush3.bf16.msra.mxu1 %v2658_v21 }
  0x1d   :  { %2556 = vmatprep.subr.bf16.mxu0 %v2659_v24  ;;  %2637 = vmatprep.subr.bf16.mxu1 %v2659_v24 }
  0x1e   :  { %1363 = vperm.xlu1 %2651, %v1229_v25   ;;  %1358 = vperm.xlu0 %2650, %v1228_v26  }
  0x20   :  { %2557 = vmatpush3.bf16.msra.mxu0 %v2659_v24  ;;  %2645 = vmatpush3.bf16.msra.mxu1 %v2659_v24 }
  0x22   :  { %1373 = vperm.xlu1 %2651, %v1231_v27   ;;  %1368 = vperm.xlu0 %2650, %v1230_v28  }
  0x23   :  { %2559 = vmatmul.mubr.bf16.vlgmr.msra.gmra.mxu0 %v2662_v29  ;;  %2595 = vmatmul.mubr.bf16.vlgmr.msra.gmra.mxu1 %v2663_v30 }
  0x24   :  { %2562 = vmatprep.mubr.bf16.mxu0 %v2664_v31  ;;  %2598 = vmatprep.mubr.bf16.mxu1 %v2665_v32 }
  0x26   :  { %1383 = vperm.xlu1 %2651, %v1233_v33   ;;  %1378 = vperm.xlu0 %2650, %v1232_v34  }
  0x2a   :  { %1393 = vperm.xlu1 %2651, %v1235_v35   ;;  %1388 = vperm.xlu0 %2650, %v1234_v36  }
  0x2b   :  { %2563 = vmatmul.mubr.bf16.gmra.mxu0 %v2666_v37  ;;  %2599 = vmatmul.mubr.bf16.gmra.mxu1 %v2667_v38 }
  0x2c   :  { %2566 = vmatprep.mubr.bf16.mxu0 %v2668_v39  ;;  %2602 = vmatprep.mubr.bf16.mxu1 %v2669_v40 }
  0x2e   :  { %1403 = vperm.xlu1 %2651, %v1237_v41   ;;  %1398 = vperm.xlu0 %2650, %v1236_v42  }
  0x32   :  { %1413 = vperm.xlu1 %2651, %v1239_v43   ;;  %1408 = vperm.xlu0 %2650, %v1238_v44  }
  0x33   :  { %2567 = vmatmul.mubr.bf16.gmra.mxu0 %v2670_v45  ;;  %2603 = vmatmul.mubr.bf16.gmra.mxu1 %v2671_v46 }
  0x34   :  { %2570 = vmatprep.mubr.bf16.mxu0 %v2672_v47  ;;  %2606 = vmatprep.mubr.bf16.mxu1 %v2673_v48 }
  0x36   :  { %1423 = vperm.xlu1 %2651, %v1241_v49   ;;  %1418 = vperm.xlu0 %2650, %v1240_v50  }
  0x3a   :  { %1433 = vperm.xlu1 %2651, %v1243_v51   ;;  %1428 = vperm.xlu0 %2650, %v1242_v52  }
  0x3b   :  { %2571 = vmatmul.mubr.bf16.gmra.mxu0 %v2674_v53  ;;  %2607 = vmatmul.mubr.bf16.gmra.mxu1 %v2675_v54 }
  0x3c   :  { %2574 = vmatprep.mubr.bf16.mxu0 %v2676_v55  ;;  %2610 = vmatprep.mubr.bf16.mxu1 %v2677_v56 }
  0x3e   :  { %1443 = vperm.xlu1 %2651, %v1245_v57   ;;  %1438 = vperm.xlu0 %2650, %v1244_v58  }
  0x42   :  { %1453 = vperm.xlu1 %2651, %v1247_v59   ;;  %1448 = vperm.xlu0 %2650, %v1246_v60  }
  0x43   :  { %2575 = vmatmul.mubr.bf16.gmra.mxu0 %v2678_v61  ;;  %2611 = vmatmul.mubr.bf16.gmra.mxu1 %v2679_v62 }
  0x44   :  { %2578 = vmatprep.mubr.bf16.mxu0 %v2680_v63  ;;  %2614 = vmatprep.mubr.bf16.mxu1 %v2681_v0 }
  0x45   :  { %9 = vsyncpa [#allocation4], 0  ;;  %v1251_v3 = vld [vmem:[%s3358_s3 + $0x128] sm:$0xff]  ;;  %v1250_v4 = vld [vmem:[%s3358_s3 + $0x120] sm:$0xff] }
  0x46   :  { %1463 = vperm.xlu1 %2651, %v1249_v1   ;;  %1458 = vperm.xlu0 %2650, %v1248_v2   ;;  %v2682_v5 = vld [vmem:[%s3355_s0 + $0x58] sm:$0xff]   ;;  %v2683_v6 = vld [vmem:[%s3355_s0 + $0xe8] sm:$0xff]   ;;  %v2684_v7 = vld [vmem:[%s3355_s0 + $0x60] sm:$0xff]  }
  0x47   :  { %v2685_v8 = vld [vmem:[%s3355_s0 + $0xf0] sm:$0xff]   ;;  %v1253_v9 = vld [vmem:[%s3358_s3 + $0x138] sm:$0xff]  ;;  %v1255_v11 = vld [vmem:[%s3358_s3 + $0x148] sm:$0xff] }
  0x48   :  { %v1252_v10 = vld [vmem:[%s3358_s3 + $0x130] sm:$0xff]  ;;  %v1254_v12 = vld [vmem:[%s3358_s3 + $0x140] sm:$0xff]  ;;  %v2686_v13 = vld [vmem:[%s3355_s0 + $0x68] sm:$0xff]  }
  0x49   :  { %v2687_v14 = vld [vmem:[%s3355_s0 + $0xf8] sm:$0xff]   ;;  %v2688_v15 = vld [vmem:[%s3355_s0 + $0x70] sm:$0xff]   ;;  %v2689_v16 = vld [vmem:[%s3355_s0 + $0x100] sm:$0xff]  }
  0x4a   :  { %1473 = vperm.xlu1 %2651, %v1251_v3   ;;  %1468 = vperm.xlu0 %2650, %v1250_v4   ;;  %v1257_v17 = vld [vmem:[%s3358_s3 + $0x158] sm:$0xff]  ;;  %v1256_v18 = vld [vmem:[%s3358_s3 + $0x150] sm:$0xff]  ;;  %v1259_v19 = vld [vmem:[%s3358_s3 + $0x168] sm:$0xff] }
  0x4b   :  { %2579 = vmatmul.mubr.bf16.gmra.mxu0 %v2682_v5  ;;  %2615 = vmatmul.mubr.bf16.gmra.mxu1 %v2683_v6  ;;  %v1258_v20 = vld [vmem:[%s3358_s3 + $0x160] sm:$0xff]  ;;  %v2690_v21 = vld [vmem:[%s3355_s0 + $0x78] sm:$0xff]   ;;  %v2691_v22 = vld [vmem:[%s3355_s0 + $0x108] sm:$0xff]  }
  0x4c   :  { %2582 = vmatprep.mubr.bf16.mxu0 %v2684_v7  ;;  %2618 = vmatprep.mubr.bf16.mxu1 %v2685_v8  ;;  %v2692_v23 = vld [vmem:[%s3355_s0 + $0x80] sm:$0xff]   ;;  %v2693_v24 = vld [vmem:[%s3355_s0 + $0x110] sm:$0xff]   ;;  %v1261_v25 = vld [vmem:[%s3358_s3 + $0x178] sm:$0xff] }
  0x4d   :  { %v1260_v26 = vld [vmem:[%s3358_s3 + $0x170] sm:$0xff]  ;;  %v1263_v27 = vld [vmem:[%s3358_s3 + $0x188] sm:$0xff]  ;;  %v1262_v28 = vld [vmem:[%s3358_s3 + $0x180] sm:$0xff] }
  0x4e   :  { %1483 = vperm.xlu1 %2651, %v1253_v9   ;;  %1478 = vperm.xlu0 %2650, %v1252_v10   ;;  %v2694_v29 = vld [vmem:[%s3355_s0 + $0x88] sm:$0xff]   ;;  %v2695_v30 = vld [vmem:[%s3355_s0 + $0x118] sm:$0xff]   ;;  %v1264_v32 = vld [vmem:[%s3358_s3 + $0x190] sm:$0xff] }
  0x4f   :  { %v1265_v31 = vld [vmem:[%s3358_s3 + $0x198] sm:$0xff]  ;;  %v1267_v33 = vld [vmem:[%s3358_s3 + $0x1a8] sm:$0xff]  ;;  %v1266_v34 = vld [vmem:[%s3358_s3 + $0x1a0] sm:$0xff] }
  0x50   :  { %v1269_v35 = vld [vmem:[%s3358_s3 + $0x1b8] sm:$0xff]  ;;  %v1268_v36 = vld [vmem:[%s3358_s3 + $0x1b0] sm:$0xff]  ;;  %v1271_v37 = vld [vmem:[%s3358_s3 + $0x1c8] sm:$0xff] }
  0x51   :  { %v1270_v38 = vld [vmem:[%s3358_s3 + $0x1c0] sm:$0xff]  ;;  %v1273_v39 = vld [vmem:[%s3358_s3 + $0x1d8] sm:$0xff]  ;;  %v1272_v40 = vld [vmem:[%s3358_s3 + $0x1d0] sm:$0xff] }
  0x52   :  { %1493 = vperm.xlu1 %2651, %v1255_v11   ;;  %1488 = vperm.xlu0 %2650, %v1254_v12   ;;  %v1275_v41 = vld [vmem:[%s3358_s3 + $0x1e8] sm:$0xff]  ;;  %v1274_v42 = vld [vmem:[%s3358_s3 + $0x1e0] sm:$0xff]  ;;  %v1277_v43 = vld [vmem:[%s3358_s3 + $0x1f8] sm:$0xff] }
  0x53   :  { %2583 = vmatmul.mubr.bf16.gmra.mxu0 %v2686_v13  ;;  %2619 = vmatmul.mubr.bf16.gmra.mxu1 %v2687_v14  ;;  %v1276_v44 = vld [vmem:[%s3358_s3 + $0x1f0] sm:$0xff]  ;;  %v1279_v47 = vld [vmem:[%s3358_s3 + $0x208] sm:$0xff]  ;;  %v1278_v48 = vld [vmem:[%s3358_s3 + $0x200] sm:$0xff] }
  0x54   :  { %2586 = vmatprep.mubr.bf16.mxu0 %v2688_v15  ;;  %2622 = vmatprep.mubr.bf16.mxu1 %v2689_v16  ;;  %v1281_v51 = vld [vmem:[%s3358_s3 + $0x218] sm:$0xff]  ;;  %v1280_v52 = vld [vmem:[%s3358_s3 + $0x210] sm:$0xff]  ;;  %v1283_v55 = vld [vmem:[%s3358_s3 + $0x228] sm:$0xff] }
  0x55   :  { %v1282_v56 = vld [vmem:[%s3358_s3 + $0x220] sm:$0xff]  ;;  %v1285_v59 = vld [vmem:[%s3358_s3 + $0x238] sm:$0xff]  ;;  %v1284_v60 = vld [vmem:[%s3358_s3 + $0x230] sm:$0xff] }
  0x56   :  { %1503 = vperm.xlu1 %2651, %v1257_v17   ;;  %1498 = vperm.xlu0 %2650, %v1256_v18  }
  0x5a   :  { %1513 = vperm.xlu1 %2651, %v1259_v19   ;;  %1508 = vperm.xlu0 %2650, %v1258_v20  }
  0x5b   :  { %2587 = vmatmul.mubr.bf16.gmra.mxu0 %v2690_v21  ;;  %2623 = vmatmul.mubr.bf16.gmra.mxu1 %v2691_v22 }
  0x5c   :  { %2590 = vmatprep.mubr.bf16.mxu0 %v2692_v23  ;;  %2626 = vmatprep.mubr.bf16.mxu1 %v2693_v24 }
  0x5e   :  { %1523 = vperm.xlu1 %2651, %v1261_v25   ;;  %1518 = vperm.xlu0 %2650, %v1260_v26  }
  0x62   :  { %1533 = vperm.xlu1 %2651, %v1263_v27   ;;  %1528 = vperm.xlu0 %2650, %v1262_v28  }
  0x63   :  { %2591 = vmatmul.mubr.bf16.gmra.mxu0 %v2694_v29  ;;  %2627 = vmatmul.mubr.bf16.gmra.mxu1 %v2695_v30 }
  0x66   :  { %1543 = vperm.xlu1 %2651, %v1265_v31   ;;  %1538 = vperm.xlu0 %2650, %v1264_v32  }
  0x6a   :  { %1553 = vperm.xlu1 %2651, %v1267_v33   ;;  %1548 = vperm.xlu0 %2650, %v1266_v34  }
  0x6e   :  { %1563 = vperm.xlu1 %2651, %v1269_v35   ;;  %1558 = vperm.xlu0 %2650, %v1268_v36   ;;  %v3182_v35 = vld [vmem:[%s3357_s2] ss:$0 sm:$0xff]  ;;  %s2719_s2 = smov [#allocation3]  }
  0x6f   :  { %s2083_s5 = sshll.u32 %s2719_s2, 4  ;;  %s2084_s5 = int_to_ptr.vmem [resolvable:$true] %s2083_s5 }
  0x70   :  { %s2696_s6 = scalar_lea.vmem %s2084_s5, 4608  ;;  %p2701_p1 = scmp.lt.s32.totalorder %s2084_s5, %s2084_s5 }
  0x71   :  { %p2697_p0 = scmp.ne.s32.totalorder %s2084_s5, %s2696_s6  ;;  %p2702_p2 = scmp.lt.s32.totalorder %s2696_s6, %s2696_s6 }
  0x72   :  { %1573 = vperm.xlu1 %2651, %v1271_v37   ;;  %1568 = vperm.xlu0 %2650, %v1270_v38  }
  0x73   :  { %p2703_p3 = por %p2702_p2, %p2701_p1 }
  0x75   :  { %p2704_p4 = pnand %p2703_p3, %p2697_p0 }
  0x76   :  { %1583 = vperm.xlu1 %2651, %v1273_v39   ;;  %1578 = vperm.xlu0 %2650, %v1272_v40  }
  0x7a   :  { %1593 = vperm.xlu1 %2651, %v1275_v41   ;;  %1588 = vperm.xlu0 %2650, %v1274_v42  }
  0x7d   :  { %v3071_v45 = vpop.permute.xlu1 %1298  ;;  %v3073_v46 = vpop.permute.xlu0 %1288 }
  0x7e   :  { %1603 = vperm.xlu1 %2651, %v1277_v43   ;;  %1598 = vperm.xlu0 %2650, %v1276_v44  }
  0x81   :  { %v3081_v49 = vpop.permute.xlu1 %1303  ;;  %v3083_v50 = vpop.permute.xlu0 %1293 }
  0x82   :  { %1613 = vperm.xlu1 %2651, %v1279_v47   ;;  %1608 = vperm.xlu0 %2650, %v1278_v48  }
  0x85   :  { %v3091_v53 = vpop.permute.xlu1 %1313  ;;  %v3093_v54 = vpop.permute.xlu0 %1308 }
  0x86   :  { %1623 = vperm.xlu1 %2651, %v1281_v51   ;;  %1618 = vperm.xlu0 %2650, %v1280_v52  }
  0x89   :  { %v3101_v57 = vpop.permute.xlu1 %1323  ;;  %v3103_v58 = vpop.permute.xlu0 %1318 }
  0x8a   :  { %1633 = vperm.xlu1 %2651, %v1283_v55   ;;  %1628 = vperm.xlu0 %2650, %v1282_v56  }
  0x8d   :  { %v3111_v61 = vpop.permute.xlu1 %1333  ;;  %v3113_v62 = vpop.permute.xlu0 %1328 }
  0x8e   :  { %1643 = vperm.xlu1 %2651, %v1285_v59   ;;  %1638 = vperm.xlu0 %2650, %v1284_v60  }
  0x91   :  { %v3115_v63 = vpop.permute.xlu1 %1343  ;;  %v3117_v0 = vpop.permute.xlu0 %1338 }
  0x95   :  { %v3119_v1 = vpop.permute.xlu1 %1353  ;;  %v3121_v2 = vpop.permute.xlu0 %1348 }
  0x99   :  { %v3123_v3 = vpop.permute.xlu1 %1363  ;;  %v3125_v4 = vpop.permute.xlu0 %1358 }
  0x9d   :  { %v3127_v5 = vpop.permute.xlu1 %1373  ;;  %v3129_v6 = vpop.permute.xlu0 %1368 }
  0xa1   :  { %v3131_v7 = vpop.permute.xlu1 %1383  ;;  %v3133_v8 = vpop.permute.xlu0 %1378 }
  0xa5   :  { %v3135_v9 = vpop.permute.xlu1 %1393  ;;  %v3137_v10 = vpop.permute.xlu0 %1388 }
  0xa9   :  { %v3139_v11 = vpop.permute.xlu1 %1403  ;;  %v3141_v12 = vpop.permute.xlu0 %1398 }
  0xad   :  { %v3143_v13 = vpop.permute.xlu1 %1413  ;;  %v3145_v14 = vpop.permute.xlu0 %1408 }
  0xae   :  { %3360 = vst [vmem:[#allocation6_spill] sm:$0xff] %v3143_v13  ;;  %3361 = vst [vmem:[#allocation7_spill] sm:$0xff] %v3145_v14 }
  0xb1   :  { %v3147_v15 = vpop.permute.xlu1 %1423  ;;  %v3149_v16 = vpop.permute.xlu0 %1418 }
  0xb5   :  { %v3151_v17 = vpop.permute.xlu1 %1433  ;;  %v3153_v18 = vpop.permute.xlu0 %1428 }
  0xb6   :  { %3362 = vst [vmem:[#allocation8_spill] sm:$0xff] %v3151_v17  ;;  %3363 = vst [vmem:[#allocation9_spill] sm:$0xff] %v3153_v18 }
  0xb9   :  { %v3155_v19 = vpop.permute.xlu1 %1443  ;;  %v3157_v20 = vpop.permute.xlu0 %1438 }
  0xba   :  { %3364 = vst [vmem:[#allocation10_spill] sm:$0xff] %v3155_v19  ;;  %3365 = vst [vmem:[#allocation11_spill] sm:$0xff] %v3157_v20 }
  0xbd   :  { %v3159_v21 = vpop.permute.xlu1 %1453  ;;  %v3161_v22 = vpop.permute.xlu0 %1448 }
  0xbe   :  { %3366 = vst [vmem:[#allocation12_spill] sm:$0xff] %v3159_v21  ;;  %3367 = vst [vmem:[#allocation13_spill] sm:$0xff] %v3161_v22 }
  0xc1   :  { %v3163_v23 = vpop.permute.xlu1 %1463  ;;  %v3165_v24 = vpop.permute.xlu0 %1458 }
  0xc2   :  { %3368 = vst [vmem:[#allocation14_spill] sm:$0xff] %v3163_v23  ;;  %3369 = vst [vmem:[#allocation15_spill] sm:$0xff] %v3165_v24 }
  0xc5   :  { %v1474_v25 = vpop.permute.xlu1 %1473  ;;  %v1469_v26 = vpop.permute.xlu0 %1468 }
  0xc9   :  { %v1484_v27 = vpop.permute.xlu1 %1483  ;;  %v1479_v28 = vpop.permute.xlu0 %1478 }
  0xcd   :  { %v3167_v29 = vpop.permute.xlu1 %1493  ;;  %v3169_v30 = vpop.permute.xlu0 %1488 }
  0xd1   :  { %v3171_v31 = vpop.permute.xlu1 %1503  ;;  %v3173_v32 = vpop.permute.xlu0 %1498 }
  0xd5   :  { %v3175_v33 = vpop.permute.xlu1 %1513  ;;  %v3177_v34 = vpop.permute.xlu0 %1508 }
  0xd9   :  { %v3184_v36 = vpop.permute.xlu1 %1523  ;;  %v3186_v37 = vpop.permute.xlu0 %1518 }
  0xdd   :  { %v3192_v56 = vpop.permute.xlu1 %1533  ;;  %v3194_v59 = vpop.permute.xlu0 %1528 }
  0xe3   :  { %v2560_v38 = vpop.f32.mrf.mxu0  ;;  %v2596_v39 = vpop.f32.mrf.mxu1 }
  0xe4   :  { %v1072_v40 = vadd.f32 %v2560_v38, %v3182_v35  ;;  %v1108_v41 = vadd.f32 %v2596_v39, %v3182_v35 }
  0xe5   :  { %v405_v42 = vpop.f32.mrf.mxu0  ;;  %v549_v43 = vpop.f32.mrf.mxu1 }
  0xe6   :  { %v1070_v44 = vadd.f32 %v3182_v35, %v405_v42  ;;  %v1106_v47 = vadd.f32 %v3182_v35, %v549_v43  ;;  %v1144_v48 = vmax.f32 %v1072_v40, 0.0  ;;  %v1180_v51 = vmax.f32 %v1108_v41, 0.0 }
  0xe7   :  { %v2561_v52 = vpop.f32.mrf.mxu0  ;;  %v2597_v55 = vpop.f32.mrf.mxu1 }
  0xe8   :  { %v1073_v60 = vadd.f32 %v2561_v52, %v3182_v35  ;;  %v1109_v38 = vadd.f32 %v2597_v55, %v3182_v35  ;;  %v1142_v21 = vmax.f32 %v1070_v44, 0.0  ;;  %v1178_v39 = vmax.f32 %v1106_v47, 0.0 }
  0xe9   :  { %v408_v22 = vpop.f32.mrf.mxu0  ;;  %v552_v23 = vpop.f32.mrf.mxu1  ;;  %v1648_v43 = vmul.f32 %v3071_v45, %v1144_v48  ;;  %v1684_v40 = vmul.f32 %v1479_v28, %v1180_v51 }
  0xea   :  { %v1145_v24 = vmax.f32 %v1073_v60, 0.0  ;;  %v1181_v42 = vmax.f32 %v1109_v38, 0.0  ;;  %v1071_v41 = vadd.f32 %v3182_v35, %v408_v22  ;;  %v1107_v17 = vadd.f32 %v3182_v35, %v552_v23  ;;  %v3205_v48 = vpop.permute.xlu1 %1543  ;;  %v3207_v22 = vpop.permute.xlu0 %1538 }
  0xeb   :  { %v2564_v18 = vpop.f32.mrf.mxu0  ;;  %v2600_v19 = vpop.f32.mrf.mxu1  ;;  %v1646_v47 = vmul.f32 %v3073_v46, %v1142_v21  ;;  %v1682_v60 = vmul.f32 %v1469_v26, %v1178_v39 }
  0xec   :  { %v1649_v20 = vmul.f32 %v3081_v49, %v1145_v24  ;;  %v1685_v52 = vmul.f32 %v1484_v27, %v1181_v42  ;;  %v1076_v55 = vadd.f32 %v2564_v18, %v3182_v35  ;;  %v1112_v44 = vadd.f32 %v2600_v19, %v3182_v35 }
  0xed   :  { %v1143_v38 = vmax.f32 %v1071_v41, 0.0  ;;  %v1179_v13 = vmax.f32 %v1107_v17, 0.0  ;;  %v421_v45 = vpop.f32.mrf.mxu0  ;;  %v565_v28 = vpop.f32.mrf.mxu1 }
  0xee   :  { %v2291_v23 = vpack.c.bf16 %v1649_v20, %v1648_v43  ;;  %v2381_v51 = vpack.c.bf16 %v1685_v52, %v1684_v40  ;;  %v1148_v14 = vmax.f32 %v1076_v55, 0.0  ;;  %v1184_v49 = vmax.f32 %v1112_v44, 0.0 }
  0xef   :  { %v1647_v24 = vmul.f32 %v3083_v50, %v1143_v38  ;;  %v1683_v18 = vmul.f32 %v1474_v25, %v1179_v13  ;;  %v1074_v19 = vadd.f32 %v3182_v35, %v421_v45  ;;  %v1110_v46 = vadd.f32 %v3182_v35, %v565_v28  ;;  %v2565_v21 = vpop.f32.mrf.mxu0  ;;  %v2601_v26 = vpop.f32.mrf.mxu1 }
  0xf0   :  { %2463 = vst [vmem:[#allocation3 + $0x8] sm:$0xff] %v2291_v23   ;;  %2481 = vst [vmem:[#allocation3 + $0x98] sm:$0xff] %v2381_v51   ;;  %v1077_v17 = vadd.f32 %v2565_v21, %v3182_v35  ;;  %v1113_v27 = vadd.f32 %v2601_v26, %v3182_v35  ;;  %v1652_v55 = vmul.f32 %v3103_v58, %v1148_v14 }
  0xf1   :  { %v2286_v39 = vpack.c.bf16 %v1647_v24, %v1646_v47  ;;  %v2376_v20 = vpack.c.bf16 %v1683_v18, %v1682_v60  ;;  %v1146_v42 = vmax.f32 %v1074_v19, 0.0  ;;  %v1182_v43 = vmax.f32 %v1110_v46, 0.0  ;;  %v424_v40 = vpop.f32.mrf.mxu0  ;;  %v568_v41 = vpop.f32.mrf.mxu1 }
  0xf2   :  { %v1149_v50 = vmax.f32 %v1077_v17, 0.0  ;;  %v1185_v13 = vmax.f32 %v1113_v27, 0.0  ;;  %v1075_v25 = vadd.f32 %v3182_v35, %v424_v40  ;;  %v1111_v52 = vadd.f32 %v3182_v35, %v568_v41  ;;  %v3218_v47 = vpop.permute.xlu1 %1553  ;;  %v3220_v60 = vpop.permute.xlu0 %1548 }
  0xf3   :  { %2287 = vst [vmem:[#allocation3] sm:$0xff] %v2286_v39   ;;  %2480 = vst [vmem:[#allocation3 + $0x90] sm:$0xff] %v2376_v20   ;;  %v1688_v44 = vmul.f32 %v3173_v32, %v1184_v49  ;;  %v2568_v38 = vpop.f32.mrf.mxu0  ;;  %v2604_v45 = vpop.f32.mrf.mxu1  ;;  %v1650_v18 = vmul.f32 %v3093_v54, %v1146_v42  ;;  %v1686_v19 = vmul.f32 %v3169_v30, %v1182_v43 }
  0xf4   :  { %v1653_v28 = vmul.f32 %v3101_v57, %v1149_v50  ;;  %v1689_v23 = vmul.f32 %v3171_v31, %v1185_v13  ;;  %v1147_v51 = vmax.f32 %v1075_v25, 0.0  ;;  %v1183_v24 = vmax.f32 %v1111_v52, 0.0 }
  0xf5   :  { %v1080_v58 = vadd.f32 %v2568_v38, %v3182_v35  ;;  %v1116_v14 = vadd.f32 %v2604_v45, %v3182_v35  ;;  %v437_v32 = vpop.f32.mrf.mxu0  ;;  %v581_v49 = vpop.f32.mrf.mxu1 }
  0xf6   :  { %v2301_v46 = vpack.c.bf16 %v1653_v28, %v1652_v55  ;;  %v2391_v21 = vpack.c.bf16 %v1689_v23, %v1688_v44  ;;  %v1651_v26 = vmul.f32 %v3091_v53, %v1147_v51  ;;  %v1687_v57 = vmul.f32 %v3167_v29, %v1183_v24  ;;  %v3234_v13 = vpop.permute.xlu1 %1563  ;;  %v3236_v25 = vpop.permute.xlu0 %1558 }
  0xf7   :  { %v1152_v17 = vmax.f32 %v1080_v58, 0.0  ;;  %v1188_v31 = vmax.f32 %v1116_v14, 0.0  ;;  %v1078_v27 = vadd.f32 %v3182_v35, %v437_v32  ;;  %v1114_v54 = vadd.f32 %v3182_v35, %v581_v49  ;;  %v2569_v39 = vpop.f32.mrf.mxu0  ;;  %v2605_v30 = vpop.f32.mrf.mxu1 }
  0xf8   :  { %2465 = vst [vmem:[#allocation3 + $0x18] sm:$0xff] %v2301_v46   ;;  %2483 = vst [vmem:[#allocation3 + $0xa8] sm:$0xff] %v2391_v21   ;;  %v2296_v20 = vpack.c.bf16 %v1651_v26, %v1650_v18  ;;  %v2386_v42 = vpack.c.bf16 %v1687_v57, %v1686_v19  ;;  %v1081_v43 = vadd.f32 %v2569_v39, %v3182_v35 }
  0xf9   :  { %v1117_v40 = vadd.f32 %v2605_v30, %v3182_v35  ;;  %v1150_v41 = vmax.f32 %v1078_v27, 0.0  ;;  %v1186_v53 = vmax.f32 %v1114_v54, 0.0  ;;  %v440_v50 = vpop.f32.mrf.mxu0  ;;  %v584_v29 = vpop.f32.mrf.mxu1  ;;  %v1656_v45 = vmul.f32 %v3117_v0, %v1152_v17 }
  0xfa   :  { %2464 = vst [vmem:[#allocation3 + $0x10] sm:$0xff] %v2296_v20   ;;  %2482 = vst [vmem:[#allocation3 + $0xa0] sm:$0xff] %v2386_v42   ;;  %v1153_v52 = vmax.f32 %v1081_v43, 0.0  ;;  %v1079_v44 = vadd.f32 %v3182_v35, %v440_v50  ;;  %v1115_v38 = vadd.f32 %v3182_v35, %v584_v29  ;;  %v1692_v28 = vmul.f32 %v3186_v37, %v1188_v31  ;;  %v3252_v54 = vpop.permute.xlu1 %1573  ;;  %v3254_v39 = vpop.permute.xlu0 %1568 }
  0xfb   :  { %v1189_v55 = vmax.f32 %v1117_v40, 0.0  ;;  %v2572_v23 = vpop.f32.mrf.mxu0  ;;  %v2608_v51 = vpop.f32.mrf.mxu1  ;;  %v1654_v14 = vmul.f32 %v3113_v62, %v1150_v41  ;;  %v1690_v32 = vmul.f32 %v3177_v34, %v1186_v53 }
  0xfc   :  { %v1657_v24 = vmul.f32 %v3115_v63, %v1153_v52  ;;  %v1151_v19 = vmax.f32 %v1079_v44, 0.0  ;;  %v1187_v58 = vmax.f32 %v1115_v38, 0.0  ;;  %v1084_v49 = vadd.f32 %v2572_v23, %v3182_v35 }
  0xfd   :  { %v1693_v18 = vmul.f32 %v3184_v36, %v1189_v55  ;;  %v1120_v46 = vadd.f32 %v2608_v51, %v3182_v35  ;;  %v453_v21 = vpop.f32.mrf.mxu0  ;;  %v597_v0 = vpop.f32.mrf.mxu1 }
  0xfe   :  { %v2311_v26 = vpack.c.bf16 %v1657_v24, %v1656_v45  ;;  %v1655_v57 = vmul.f32 %v3111_v61, %v1151_v19  ;;  %v1691_v63 = vmul.f32 %v3175_v33, %v1187_v58  ;;  %v1156_v17 = vmax.f32 %v1084_v49, 0.0  ;;  %v3268_v49 = vpop.permute.xlu1 %1583 }
  0xff   :  { %v2401_v37 = vpack.c.bf16 %v1693_v18, %v1692_v28  ;;  %v1192_v36 = vmax.f32 %v1120_v46, 0.0  ;;  %v1082_v31 = vadd.f32 %v3182_v35, %v453_v21  ;;  %v1118_v62 = vadd.f32 %v3182_v35, %v597_v0  ;;  %v2573_v27 = vpop.f32.mrf.mxu0  ;;  %v2609_v34 = vpop.f32.mrf.mxu1 }
 0x100   :  { %2467 = vst [vmem:[#allocation3 + $0x28] sm:$0xff] %v2311_v26   ;;  %v2306_v30 = vpack.c.bf16 %v1655_v57, %v1654_v14  ;;  %v2396_v20 = vpack.c.bf16 %v1691_v63, %v1690_v32  ;;  %v1085_v61 = vadd.f32 %v2573_v27, %v3182_v35  ;;  %v1121_v33 = vadd.f32 %v2609_v34, %v3182_v35 }
 0x101   :  { %2485 = vst [vmem:[#allocation3 + $0xb8] sm:$0xff] %v2401_v37   ;;  %v1154_v42 = vmax.f32 %v1082_v31, 0.0  ;;  %v1190_v43 = vmax.f32 %v1118_v62, 0.0  ;;  %v456_v40 = vpop.f32.mrf.mxu0  ;;  %v600_v41 = vpop.f32.mrf.mxu1  ;;  %v1660_v55 = vmul.f32 %v3125_v4, %v1156_v17  ;;  %v1696_v44 = vmul.f32 %v3207_v22, %v1192_v36 }
 0x102   :  { %2466 = vst [vmem:[#allocation3 + $0x20] sm:$0xff] %v2306_v30   ;;  %2484 = vst [vmem:[#allocation3 + $0xb0] sm:$0xff] %v2396_v20   ;;  %v1157_v53 = vmax.f32 %v1085_v61, 0.0  ;;  %v1193_v50 = vmax.f32 %v1121_v33, 0.0  ;;  %v1083_v29 = vadd.f32 %v3182_v35, %v456_v40  ;;  %v1119_v52 = vadd.f32 %v3182_v35, %v600_v41  ;;  %v3270_v22 = vpop.permute.xlu0 %1578  ;;  %v3282_v41 = vpop.permute.xlu1 %1593 }
 0x103   :  { %v2576_v38 = vpop.f32.mrf.mxu0  ;;  %v2612_v45 = vpop.f32.mrf.mxu1  ;;  %v1658_v18 = vmul.f32 %v3121_v2, %v1154_v42  ;;  %v1694_v19 = vmul.f32 %v3194_v59, %v1190_v43 }
 0x104   :  { %v1661_v28 = vmul.f32 %v3123_v3, %v1157_v53  ;;  %v1697_v23 = vmul.f32 %v3205_v48, %v1193_v50  ;;  %v1155_v51 = vmax.f32 %v1083_v29, 0.0  ;;  %v1191_v24 = vmax.f32 %v1119_v52, 0.0 }
 0x105   :  { %v1088_v58 = vadd.f32 %v2576_v38, %v3182_v35  ;;  %v1124_v14 = vadd.f32 %v2612_v45, %v3182_v35  ;;  %v469_v32 = vpop.f32.mrf.mxu0  ;;  %v613_v4 = vpop.f32.mrf.mxu1 }
 0x106   :  { %v2321_v46 = vpack.c.bf16 %v1661_v28, %v1660_v55  ;;  %v2411_v3 = vpack.c.bf16 %v1697_v23, %v1696_v44  ;;  %v1659_v48 = vmul.f32 %v3119_v1, %v1155_v51  ;;  %v1695_v21 = vmul.f32 %v3192_v56, %v1191_v24  ;;  %v3284_v53 = vpop.permute.xlu0 %1588 }
 0x107   :  { %v1160_v0 = vmax.f32 %v1088_v58, 0.0  ;;  %v1196_v2 = vmax.f32 %v1124_v14, 0.0  ;;  %v1086_v59 = vadd.f32 %v3182_v35, %v469_v32  ;;  %v1122_v26 = vadd.f32 %v3182_v35, %v613_v4  ;;  %v2577_v37 = vpop.f32.mrf.mxu0  ;;  %v2613_v57 = vpop.f32.mrf.mxu1 }
 0x108   :  { %2469 = vst [vmem:[#allocation3 + $0x38] sm:$0xff] %v2321_v46   ;;  %2487 = vst [vmem:[#allocation3 + $0xc8] sm:$0xff] %v2411_v3   ;;  %v2316_v63 = vpack.c.bf16 %v1659_v48, %v1658_v18  ;;  %v2406_v17 = vpack.c.bf16 %v1695_v21, %v1694_v19  ;;  %v1089_v36 = vadd.f32 %v2577_v37, %v3182_v35  ;;  %v1604_v21 = vpop.permute.xlu1 %1603 }
 0x109   :  { %v1125_v31 = vadd.f32 %v2613_v57, %v3182_v35  ;;  %v1158_v62 = vmax.f32 %v1086_v59, 0.0  ;;  %v1194_v1 = vmax.f32 %v1122_v26, 0.0  ;;  %v472_v27 = vpop.f32.mrf.mxu0  ;;  %v616_v56 = vpop.f32.mrf.mxu1  ;;  %v1664_v33 = vmul.f32 %v3133_v8, %v1160_v0 }
 0x10a   :  { %2468 = vst [vmem:[#allocation3 + $0x30] sm:$0xff] %v2316_v63   ;;  %2486 = vst [vmem:[#allocation3 + $0xc0] sm:$0xff] %v2406_v17   ;;  %v1161_v34 = vmax.f32 %v1089_v36, 0.0  ;;  %v1087_v20 = vadd.f32 %v3182_v35, %v472_v27  ;;  %v1123_v61 = vadd.f32 %v3182_v35, %v616_v56  ;;  %v1700_v42 = vmul.f32 %v3236_v25, %v1196_v2  ;;  %v1599_v0 = vpop.permute.xlu0 %1598 }
 0x10b   :  { %v1197_v30 = vmax.f32 %v1125_v31, 0.0  ;;  %v2580_v43 = vpop.f32.mrf.mxu0  ;;  %v2616_v40 = vpop.f32.mrf.mxu1  ;;  %v1662_v44 = vmul.f32 %v3129_v6, %v1158_v62  ;;  %v1698_v38 = vmul.f32 %v3220_v60, %v1194_v1 }
 0x10c   :  { %v1665_v50 = vmul.f32 %v3131_v7, %v1161_v34  ;;  %v1159_v52 = vmax.f32 %v1087_v20, 0.0  ;;  %v1195_v55 = vmax.f32 %v1123_v61, 0.0  ;;  %v1092_v8 = vadd.f32 %v2580_v43, %v3182_v35 }
 0x10d   :  { %v1701_v29 = vmul.f32 %v3234_v13, %v1197_v30  ;;  %v1128_v25 = vadd.f32 %v2616_v40, %v3182_v35  ;;  %v485_v45 = vpop.f32.mrf.mxu0  ;;  %v629_v28 = vpop.f32.mrf.mxu1 }
 0x10e   :  { %v2331_v23 = vpack.c.bf16 %v1665_v50, %v1664_v33  ;;  %v1663_v24 = vmul.f32 %v3127_v5, %v1159_v52  ;;  %v1699_v7 = vmul.f32 %v3218_v47, %v1195_v55  ;;  %v1164_v18 = vmax.f32 %v1092_v8, 0.0  ;;  %v3314_v52 = vpop.permute.xlu0 %1608 }
 0x10f   :  { %v2421_v51 = vpack.c.bf16 %v1701_v29, %v1700_v42  ;;  %v1200_v13 = vmax.f32 %v1128_v25, 0.0  ;;  %v1090_v19 = vadd.f32 %v3182_v35, %v485_v45  ;;  %v1126_v6 = vadd.f32 %v3182_v35, %v629_v28  ;;  %v2581_v58 = vpop.f32.mrf.mxu0  ;;  %v2617_v60 = vpop.f32.mrf.mxu1 }
 0x110   :  { %2471 = vst [vmem:[#allocation3 + $0x48] sm:$0xff] %v2331_v23   ;;  %v2326_v14 = vpack.c.bf16 %v1663_v24, %v1662_v44  ;;  %v2416_v32 = vpack.c.bf16 %v1699_v7, %v1698_v38  ;;  %v1093_v4 = vadd.f32 %v2581_v58, %v3182_v35  ;;  %v1129_v46 = vadd.f32 %v2617_v60, %v3182_v35  ;;  %v3312_v29 = vpop.permute.xlu1 %1613 }
 0x111   :  { %2489 = vst [vmem:[#allocation3 + $0xd8] sm:$0xff] %v2421_v51   ;;  %v1162_v3 = vmax.f32 %v1090_v19, 0.0  ;;  %v1198_v5 = vmax.f32 %v1126_v6, 0.0  ;;  %v488_v48 = vpop.f32.mrf.mxu0  ;;  %v632_v47 = vpop.f32.mrf.mxu1  ;;  %v1668_v57 = vmul.f32 %v3141_v12, %v1164_v18  ;;  %v1704_v63 = vmul.f32 %v3270_v22, %v1200_v13 }
 0x112   :  { %2470 = vst [vmem:[#allocation3 + $0x40] sm:$0xff] %v2326_v14   ;;  %2488 = vst [vmem:[#allocation3 + $0xd0] sm:$0xff] %v2416_v32   ;;  %v1165_v2 = vmax.f32 %v1093_v4, 0.0  ;;  %v1201_v59 = vmax.f32 %v1129_v46, 0.0  ;;  %v1091_v26 = vadd.f32 %v3182_v35, %v488_v48  ;;  %v1127_v37 = vadd.f32 %v3182_v35, %v632_v47  ;;  %v3370_v32 = vld [vmem:[#allocation7_spill] sm:$0xff] }
 0x113   :  { %v2584_v17 = vpop.f32.mrf.mxu0  ;;  %v2620_v36 = vpop.f32.mrf.mxu1  ;;  %v1666_v56 = vmul.f32 %v3137_v10, %v1162_v3  ;;  %v1702_v34 = vmul.f32 %v3254_v39, %v1198_v5 }
 0x114   :  { %v1669_v31 = vmul.f32 %v3139_v11, %v1165_v2  ;;  %v1705_v62 = vmul.f32 %v3268_v49, %v1201_v59  ;;  %v1163_v1 = vmax.f32 %v1091_v26, 0.0  ;;  %v1199_v27 = vmax.f32 %v1127_v37, 0.0  ;;  %v1624_v2 = vpop.permute.xlu1 %1623  ;;  %v3371_v26 = vld [vmem:[#allocation6_spill] sm:$0xff] }
 0x115   :  { %v1096_v30 = vadd.f32 %v2584_v17, %v3182_v35  ;;  %v1132_v20 = vadd.f32 %v2620_v36, %v3182_v35  ;;  %v501_v61 = vpop.f32.mrf.mxu0  ;;  %v645_v12 = vpop.f32.mrf.mxu1 }
 0x116   :  { %v2341_v33 = vpack.c.bf16 %v1669_v31, %v1668_v57  ;;  %v2431_v22 = vpack.c.bf16 %v1705_v62, %v1704_v63  ;;  %v1667_v42 = vmul.f32 %v3135_v9, %v1163_v1  ;;  %v1703_v11 = vmul.f32 %v3252_v54, %v1199_v27 }
 0x117   :  { %v1168_v43 = vmax.f32 %v1096_v30, 0.0  ;;  %v1204_v49 = vmax.f32 %v1132_v20, 0.0  ;;  %v1094_v40 = vadd.f32 %v3182_v35, %v501_v61  ;;  %v1130_v10 = vadd.f32 %v3182_v35, %v645_v12  ;;  %v2585_v50 = vpop.f32.mrf.mxu0  ;;  %v2621_v39 = vpop.f32.mrf.mxu1 }
 0x118   :  { %2473 = vst [vmem:[#allocation3 + $0x58] sm:$0xff] %v2341_v33   ;;  %2491 = vst [vmem:[#allocation3 + $0xe8] sm:$0xff] %v2431_v22   ;;  %v2336_v55 = vpack.c.bf16 %v1667_v42, %v1666_v56  ;;  %v2426_v44 = vpack.c.bf16 %v1703_v11, %v1702_v34  ;;  %v1097_v9 = vadd.f32 %v2585_v50, %v3182_v35  ;;  %v3372_v22 = vld [vmem:[#allocation11_spill] sm:$0xff]  ;;  %v3373_v50 = vld [vmem:[#allocation10_spill] sm:$0xff] }
 0x119   :  { %v1133_v54 = vadd.f32 %v2621_v39, %v3182_v35  ;;  %v1166_v38 = vmax.f32 %v1094_v40, 0.0  ;;  %v1202_v8 = vmax.f32 %v1130_v10, 0.0  ;;  %v504_v25 = vpop.f32.mrf.mxu0  ;;  %v648_v45 = vpop.f32.mrf.mxu1  ;;  %v1672_v7 = vmul.f32 %v3149_v16, %v1168_v43 }
 0x11a   :  { %2472 = vst [vmem:[#allocation3 + $0x50] sm:$0xff] %v2336_v55   ;;  %2490 = vst [vmem:[#allocation3 + $0xe0] sm:$0xff] %v2426_v44   ;;  %v1169_v28 = vmax.f32 %v1097_v9, 0.0  ;;  %v1095_v51 = vadd.f32 %v3182_v35, %v504_v25  ;;  %v1131_v24 = vadd.f32 %v3182_v35, %v648_v45  ;;  %v1708_v18 = vmul.f32 %v1599_v0, %v1204_v49  ;;  %v1619_v16 = vpop.permute.xlu0 %1618  ;;  %v1634_v40 = vpop.permute.xlu1 %1633 }
 0x11b   :  { %v1205_v23 = vmax.f32 %v1133_v54, 0.0  ;;  %v2588_v13 = vpop.f32.mrf.mxu0  ;;  %v2624_v19 = vpop.f32.mrf.mxu1  ;;  %v1670_v4 = vmul.f32 %v3370_v32, %v1166_v38  ;;  %v1706_v46 = vmul.f32 %v3284_v53, %v1202_v8  ;;  %v3374_v54 = vld [vmem:[#allocation9_spill] sm:$0xff] }
 0x11c   :  { %v1673_v6 = vmul.f32 %v3147_v15, %v1169_v28  ;;  %v1167_v60 = vmax.f32 %v1095_v51, 0.0  ;;  %v1203_v14 = vmax.f32 %v1131_v24, 0.0  ;;  %v1100_v3 = vadd.f32 %v2588_v13, %v3182_v35 }
 0x11d   :  { %v1709_v58 = vmul.f32 %v1604_v21, %v1205_v23  ;;  %v1136_v5 = vadd.f32 %v2624_v19, %v3182_v35  ;;  %v517_v48 = vpop.f32.mrf.mxu0  ;;  %v661_v47 = vpop.f32.mrf.mxu1 }
 0x11e   :  { %v2351_v0 = vpack.c.bf16 %v1673_v6, %v1672_v7  ;;  %v1671_v37 = vmul.f32 %v3371_v26, %v1167_v60  ;;  %v1707_v15 = vmul.f32 %v3282_v41, %v1203_v14  ;;  %v1172_v21 = vmax.f32 %v1100_v3, 0.0  ;;  %v1629_v10 = vpop.permute.xlu0 %1628  ;;  %v3375_v7 = vld [vmem:[#allocation8_spill] sm:$0xff] }
 0x11f   :  { %v2441_v59 = vpack.c.bf16 %v1709_v58, %v1708_v18  ;;  %v1208_v57 = vmax.f32 %v1136_v5, 0.0  ;;  %v1098_v63 = vadd.f32 %v3182_v35, %v517_v48  ;;  %v1134_v53 = vadd.f32 %v3182_v35, %v661_v47  ;;  %v2589_v17 = vpop.f32.mrf.mxu0  ;;  %v2625_v36 = vpop.f32.mrf.mxu1 }
 0x120   :  { %2475 = vst [vmem:[#allocation3 + $0x68] sm:$0xff] %v2351_v0   ;;  %v2346_v31 = vpack.c.bf16 %v1671_v37, %v1670_v4  ;;  %v2436_v62 = vpack.c.bf16 %v1707_v15, %v1706_v46  ;;  %v1101_v1 = vadd.f32 %v2589_v17, %v3182_v35  ;;  %v1137_v27 = vadd.f32 %v2625_v36, %v3182_v35  ;;  %v1644_v37 = vpop.permute.xlu1 %1643  ;;  %v3376_v15 = vld [vmem:[#allocation15_spill] sm:$0xff] }
 0x121   :  { %2493 = vst [vmem:[#allocation3 + $0xf8] sm:$0xff] %v2441_v59   ;;  %v1170_v56 = vmax.f32 %v1098_v63, 0.0  ;;  %v1206_v34 = vmax.f32 %v1134_v53, 0.0  ;;  %v520_v30 = vpop.f32.mrf.mxu0  ;;  %v664_v41 = vpop.f32.mrf.mxu1  ;;  %v1676_v42 = vmul.f32 %v3372_v22, %v1172_v21  ;;  %v1712_v11 = vmul.f32 %v1619_v16, %v1208_v57  ;;  %v3377_v63 = vld [vmem:[#allocation14_spill] sm:$0xff] }
 0x122   :  { %2474 = vst [vmem:[#allocation3 + $0x60] sm:$0xff] %v2346_v31   ;;  %2492 = vst [vmem:[#allocation3 + $0xf0] sm:$0xff] %v2436_v62   ;;  %v1173_v20 = vmax.f32 %v1101_v1, 0.0  ;;  %v1209_v61 = vmax.f32 %v1137_v27, 0.0  ;;  %v1099_v12 = vadd.f32 %v3182_v35, %v520_v30  ;;  %v1135_v33 = vadd.f32 %v3182_v35, %v664_v41  ;;  %v3378_v62 = vld [vmem:[#allocation13_spill] sm:$0xff]  ;;  %v3379_v30 = vld [vmem:[#allocation12_spill] sm:$0xff] }
 0x123   :  { %v2592_v43 = vpop.f32.mrf.mxu0  ;;  %v2628_v49 = vpop.f32.mrf.mxu1  ;;  %v1674_v38 = vmul.f32 %v3374_v54, %v1170_v56  ;;  %v1710_v8 = vmul.f32 %v3314_v52, %v1206_v34 }
 0x124   :  { %v1677_v39 = vmul.f32 %v3373_v50, %v1173_v20  ;;  %v1713_v55 = vmul.f32 %v1624_v2, %v1209_v61  ;;  %v1171_v44 = vmax.f32 %v1099_v12, 0.0  ;;  %v1207_v9 = vmax.f32 %v1135_v33, 0.0  ;;  %v1639_v2 = vpop.permute.xlu0 %1638 }
 0x125   :  { %v1104_v25 = vadd.f32 %v2592_v43, %v3182_v35  ;;  %v1140_v45 = vadd.f32 %v2628_v49, %v3182_v35  ;;  %v533_v28 = vpop.f32.mrf.mxu0  ;;  %v677_v23 = vpop.f32.mrf.mxu1 }
 0x126   :  { %v2361_v51 = vpack.c.bf16 %v1677_v39, %v1676_v42  ;;  %v2451_v24 = vpack.c.bf16 %v1713_v55, %v1712_v11  ;;  %v1675_v18 = vmul.f32 %v3375_v7, %v1171_v44  ;;  %v1711_v13 = vmul.f32 %v3312_v29, %v1207_v9 }
 0x127   :  { %v1176_v19 = vmax.f32 %v1104_v25, 0.0  ;;  %v1212_v6 = vmax.f32 %v1140_v45, 0.0  ;;  %v1102_v58 = vadd.f32 %v3182_v35, %v533_v28  ;;  %v1138_v60 = vadd.f32 %v3182_v35, %v677_v23  ;;  %v2593_v14 = vpop.f32.mrf.mxu0  ;;  %v2629_v52 = vpop.f32.mrf.mxu1 }
 0x128   :  { %2477 = vst [vmem:[#allocation3 + $0x78] sm:$0xff] %v2361_v51   ;;  %2495 = vst [vmem:[#allocation3 + $0x108] sm:$0xff] %v2451_v24   ;;  %v2356_v32 = vpack.c.bf16 %v1675_v18, %v1674_v38  ;;  %v2446_v4 = vpack.c.bf16 %v1711_v13, %v1710_v8  ;;  %v1105_v46 = vadd.f32 %v2593_v14, %v3182_v35 }
 0x129   :  { %v1141_v3 = vadd.f32 %v2629_v52, %v3182_v35  ;;  %v1174_v5 = vmax.f32 %v1102_v58, 0.0  ;;  %v1210_v48 = vmax.f32 %v1138_v60, 0.0  ;;  %v536_v47 = vpop.f32.mrf.mxu0  ;;  %v680_v29 = vpop.f32.mrf.mxu1  ;;  %v1680_v21 = vmul.f32 %v3376_v15, %v1176_v19 }
 0x12a   :  { %2476 = vst [vmem:[#allocation3 + $0x70] sm:$0xff] %v2356_v32   ;;  %2494 = vst [vmem:[#allocation3 + $0x100] sm:$0xff] %v2446_v4   ;;  %v1177_v16 = vmax.f32 %v1105_v46, 0.0  ;;  %v1103_v59 = vadd.f32 %v3182_v35, %v536_v47  ;;  %v1139_v26 = vadd.f32 %v3182_v35, %v680_v29  ;;  %v1716_v57 = vmul.f32 %v1639_v2, %v1212_v6 }
 0x12b   :  { %v1213_v0 = vmax.f32 %v1141_v3, 0.0  ;;  %v1678_v1 = vmul.f32 %v3378_v62, %v1174_v5  ;;  %v1714_v27 = vmul.f32 %v1629_v10, %v1210_v48 }
 0x12c   :  { %v1681_v53 = vmul.f32 %v3377_v63, %v1177_v16  ;;  %v1175_v36 = vmax.f32 %v1103_v59, 0.0  ;;  %v1211_v31 = vmax.f32 %v1139_v26, 0.0 }
 0x12d   :  { %v1717_v17 = vmul.f32 %v1644_v37, %v1213_v0 }
 0x12e   :  { %v2371_v56 = vpack.c.bf16 %v1681_v53, %v1680_v21  ;;  %v1679_v41 = vmul.f32 %v3379_v30, %v1175_v36  ;;  %v1715_v20 = vmul.f32 %v1634_v40, %v1211_v31 }
 0x12f   :  { %v2461_v34 = vpack.c.bf16 %v1717_v17, %v1716_v57 }
 0x130   :  { %2479 = vst [vmem:[#allocation3 + $0x88] sm:$0xff] %v2371_v56   ;;  %v2366_v35 = vpack.c.bf16 %v1679_v41, %v1678_v1  ;;  %v2456_v61 = vpack.c.bf16 %v1715_v20, %v1714_v27 }
 0x131   :  { %2497 = vst [vmem:[#allocation3 + $0x118] sm:$0xff] %v2461_v34  }
 0x132   :  { %2478 = vst [vmem:[#allocation3 + $0x80] sm:$0xff] %v2366_v35   ;;  %2496 = vst [vmem:[#allocation3 + $0x110] sm:$0xff] %v2456_v61  }
 0x133   :  { %2707 = shalt.err (!%p2704_p4)
}
 0x134   :  { %s2720_s7 = smov 64   ;;  %s2721_s8 = smov 4  }
 0x135   :  { %2089 = dma.vmem_to_hbm [thread:$0]  %s2084_s5, 4608, %s3359_s4, [#allocation4], %s2720_s7, %s2720_s7, %s2721_s8  }
 0x136   :  { %2716 = dma.done.wait [#allocation4], 4608  }
 0x137   :  { %2717 = vsyncadd [#allocation4], 4294962688 }
 0x138   :  { %2093 = vsyncpa [#allocation4], 1 }

</bundles_post_ra>
